<compile_context>
chip_gen: v7x
topology: tpu7x:2x2x1
jax: 0.10.0
libtpu: 0.0.40
codegen_flags: <defaults>
</compile_context>

<pallas_src>
import functools

import jax
import jax.numpy as jnp
from jax.experimental import pallas as pl
from jax.experimental.pallas import tpu as pltpu


def _round_up(n, m):
    return ((n + m - 1) // m) * m


def _pad2(a, rows, cols):
    r, c = a.shape
    return jnp.pad(a, ((0, rows - r), (0, cols - c)))


def class_block_kernel(x_ref, w1_ref, b1_ref, w2_ref, b2_ref, out_ref, *, relu):
    # Linear 1 (BN already folded into w1/b1); bf16 operands, f32 accumulation.
    h = jnp.dot(x_ref[...], w1_ref[...],
                preferred_element_type=jnp.float32) + b1_ref[...]

    # Optional LeakyReLU(0.1), in f32.
    if relu:
        h = jnp.where(h >= 0, h, 0.1 * h)

    # Dropout is identity in eval mode.
    # Linear 2: cast the activation to bf16 for the MXU, accumulate in f32.
    out = jnp.dot(h.astype(w2_ref.dtype), w2_ref[...],
                  preferred_element_type=jnp.float32) + b2_ref[...]
    out_ref[...] = out.astype(out_ref.dtype)


def class_block_forward(x, params, *, relu=False, eps=1e-5, tm=256):
    """Eval-mode ClassBlock forward. x: (B, input_dim) float32."""
    B, input_dim = x.shape
    num_bottleneck = params["w1"].shape[1]
    class_num = params["w2"].shape[1]

    # ---- Fold eval-mode BatchNorm into the first Linear (wrapper-side). ----
    scale = params["gamma"] * jax.lax.rsqrt(params["running_var"] + eps)  # (1, H)
    w1 = params["w1"] * scale                                             # (K, H)
    b1 = (params["b1"] - params["running_mean"]) * scale + params["beta"]  # (1, H)
    w2, b2 = params["w2"], params["b2"]

    # ---- Pad to lane-dense (multiple-of-128) feature axes, sublane-aligned
    # batch; cast matmul operands to bf16, keep biases in f32. ----
    K = _round_up(input_dim, 128)
    H = _round_up(num_bottleneck, 128)
    N = _round_up(class_num, 128)
    TM = min(tm, _round_up(B, 8))
    Bp = _round_up(B, TM)

    x_p = _pad2(x, Bp, K).astype(jnp.bfloat16)
    w1_p = _pad2(w1, K, H).astype(jnp.bfloat16)
    b1_p = _pad2(b1, 1, H).astype(jnp.float32)
    w2_p = _pad2(w2, H, N).astype(jnp.bfloat16)
    b2_p = _pad2(b2, 1, N).astype(jnp.float32)

    kernel = functools.partial(class_block_kernel, relu=relu)
    out_p = pl.pallas_call(
        kernel,
        out_shape=jax.ShapeDtypeStruct((Bp, N), jnp.float32),
        grid=(Bp // TM,),
        in_specs=[
            pl.BlockSpec((TM, K), lambda i: (i, 0)),   # x: streamed per batch tile
            pl.BlockSpec((K, H), lambda i: (0, 0)),    # W1': resident
            pl.BlockSpec((1, H), lambda i: (0, 0)),    # b1': resident
            pl.BlockSpec((H, N), lambda i: (0, 0)),    # W2 : resident
            pl.BlockSpec((1, N), lambda i: (0, 0)),    # b2 : resident
        ],
        out_specs=pl.BlockSpec((TM, N), lambda i: (i, 0)),
        compiler_params=pltpu.CompilerParams(
            dimension_semantics=("parallel",)),
    )(x_p, w1_p, b1_p, w2_p, b2_p)

    return out_p[:B, :class_num]


def init_class_block_params(key, input_dim, class_num, num_bottleneck=512):
    """Deterministic init matching weights_init_kaiming / weights_init_classifier."""
    k1, k2, k3 = jax.random.split(key, 3)

    # Linear1: kaiming_normal_(a=0, mode='fan_out') -> std = sqrt(2 / fan_out).
    # PyTorch weight is (out, in); we store transposed (in, out).
    std1 = (2.0 / num_bottleneck) ** 0.5
    w1 = jax.random.normal(k1, (input_dim, num_bottleneck), jnp.float32) * std1
    b1 = jnp.zeros((1, num_bottleneck), jnp.float32)

    # BatchNorm1d: gamma ~ N(1.0, 0.02), beta = 0; running stats default 0 / 1.
    gamma = 1.0 + 0.02 * jax.random.normal(k2, (1, num_bottleneck), jnp.float32)
    beta = jnp.zeros((1, num_bottleneck), jnp.float32)
    running_mean = jnp.zeros((1, num_bottleneck), jnp.float32)
    running_var = jnp.ones((1, num_bottleneck), jnp.float32)

    # Classifier Linear: normal_(std=0.001), bias = 0; stored transposed (in, out).
    w2 = 0.001 * jax.random.normal(k3, (num_bottleneck, class_num), jnp.float32)
    b2 = jnp.zeros((1, class_num), jnp.float32)

    return dict(w1=w1, b1=b1, gamma=gamma, beta=beta,
                running_mean=running_mean, running_var=running_var,
                w2=w2, b2=b2)


def _reference(x, params, *, relu, eps=1e-5):
    """Pure-JAX reference following the same precision path (bf16 matmuls,
    f32 accumulation) as the kernel."""
    scale = params["gamma"] * jax.lax.rsqrt(params["running_var"] + eps)
    w1 = (params["w1"] * scale).astype(jnp.bfloat16)
    b1 = (params["b1"] - params["running_mean"]) * scale + params["beta"]
    h = jnp.dot(x.astype(jnp.bfloat16), w1,
                preferred_element_type=jnp.float32) + b1
    if relu:
        h = jnp.where(h >= 0, h, 0.1 * h)
    return jnp.dot(h.astype(jnp.bfloat16), params["w2"].astype(jnp.bfloat16),
                   preferred_element_type=jnp.float32) + params["b2"]


if __name__ == "__main__":
    key = jax.random.PRNGKey(0)
    k_x, k_p = jax.random.split(key)

    # Small demo shapes consistent with the module (real use: input_dim=2048,
    # num_bottleneck=512, class_num ~ 751).
    B, input_dim, num_bottleneck, class_num = 8, 32, 64, 16
    x = jax.random.normal(k_x, (B, input_dim), jnp.float32)
    params = init_class_block_params(k_p, input_dim, class_num, num_bottleneck)

    ok = True
    for relu in (False, True):
        out = class_block_forward(x, params, relu=relu)
        out = jax.block_until_ready(out)
        ref = _reference(x, params, relu=relu)
        assert out.shape == (B, class_num)
        ok &= bool(jnp.allclose(out, ref, atol=5e-3, rtol=5e-3))

    if ok:
        print("KERNEL_OK")
</pallas_src>

<mosaic_0001>
module attributes {stable_mosaic.version = 11 : i64} {
  func.func @class_block_kernel(%arg0: i32, %arg1: memref<8x128xbf16, #tpu.memory_space<vmem>>, %arg2: memref<128x128xbf16, #tpu.memory_space<vmem>>, %arg3: memref<1x128xf32, #tpu.memory_space<vmem>>, %arg4: memref<128x128xbf16, #tpu.memory_space<vmem>>, %arg5: memref<1x128xf32, #tpu.memory_space<vmem>>, %arg6: memref<8x128xf32, #tpu.memory_space<vmem>>) attributes {dimension_semantics = [#tpu.dimension_semantics<parallel>], iteration_bounds = array<i64: 1>, scalar_prefetch = 0 : i64, scratch_operands = 0 : i64, tpu.core_type = #tpu.core_type<tc>, window_params = [{transform_indices = @transform_0, window_bounds = array<i64: 8, 128>}, {pipeline_mode = #tpu.pipeline_mode<synchronous>, transform_indices = @transform_1, window_bounds = array<i64: 128, 128>}, {pipeline_mode = #tpu.pipeline_mode<synchronous>, transform_indices = @transform_2, window_bounds = array<i64: 1, 128>}, {pipeline_mode = #tpu.pipeline_mode<synchronous>, transform_indices = @transform_3, window_bounds = array<i64: 128, 128>}, {pipeline_mode = #tpu.pipeline_mode<synchronous>, transform_indices = @transform_4, window_bounds = array<i64: 1, 128>}, {transform_indices = @transform_5, window_bounds = array<i64: 8, 128>}]} {
    %c0 = arith.constant 0 : index
    %c0_0 = arith.constant 0 : index
    %0 = vector.load %arg1[%c0, %c0_0] : memref<8x128xbf16, #tpu.memory_space<vmem>>, vector<8x128xbf16>
    %c0_1 = arith.constant 0 : index
    %c0_2 = arith.constant 0 : index
    %1 = vector.load %arg2[%c0_1, %c0_2] : memref<128x128xbf16, #tpu.memory_space<vmem>>, vector<128x128xbf16>
    %cst = arith.constant dense<0.000000e+00> : vector<8x128xf32>
    %2 = tpu.matmul %0, %1, %cst {dimension_numbers = #tpu.dot_dimension_numbers<[1], [0], [0], [1], [0, 0, 1, 1], [], []>} : vector<8x128xbf16>, vector<128x128xbf16>, vector<8x128xf32> -> vector<8x128xf32>
    %c0_3 = arith.constant 0 : index
    %c0_4 = arith.constant 0 : index
    %3 = vector.load %arg3[%c0_3, %c0_4] : memref<1x128xf32, #tpu.memory_space<vmem>>, vector<1x128xf32>
    %4 = vector.broadcast %3 : vector<1x128xf32> to vector<8x128xf32>
    %5 = arith.addf %2, %4 : vector<8x128xf32>
    %6 = arith.truncf %5 : vector<8x128xf32> to vector<8x128xbf16>
    %c0_5 = arith.constant 0 : index
    %c0_6 = arith.constant 0 : index
    %7 = vector.load %arg4[%c0_5, %c0_6] : memref<128x128xbf16, #tpu.memory_space<vmem>>, vector<128x128xbf16>
    %cst_7 = arith.constant dense<0.000000e+00> : vector<8x128xf32>
    %8 = tpu.matmul %6, %7, %cst_7 {dimension_numbers = #tpu.dot_dimension_numbers<[1], [0], [0], [1], [0, 0, 1, 1], [], []>} : vector<8x128xbf16>, vector<128x128xbf16>, vector<8x128xf32> -> vector<8x128xf32>
    %c0_8 = arith.constant 0 : index
    %c0_9 = arith.constant 0 : index
    %9 = vector.load %arg5[%c0_8, %c0_9] : memref<1x128xf32, #tpu.memory_space<vmem>>, vector<1x128xf32>
    %10 = vector.broadcast %9 : vector<1x128xf32> to vector<8x128xf32>
    %11 = arith.addf %8, %10 : vector<8x128xf32>
    %c0_10 = arith.constant 0 : index
    %c0_11 = arith.constant 0 : index
    %12 = vector.load %arg6[%c0_10, %c0_11] : memref<8x128xf32, #tpu.memory_space<vmem>>, vector<8x128xf32>
    tpu.vector_store %arg6[%c0_10, %c0_11], %11 {strides = array<i32>} : memref<8x128xf32, #tpu.memory_space<vmem>>, vector<8x128xf32>,
    return
  }
  func.func @transform_0(%arg0: i32) -> (i32, i32) {
    %c0_i32 = arith.constant 0 : i32
    %c0_i32_0 = arith.constant 0 : i32
    return %arg0, %c0_i32 : i32, i32
  }
  func.func @transform_1(%arg0: i32) -> (i32, i32) {
    %c0_i32 = arith.constant 0 : i32
    %c0_i32_0 = arith.constant 0 : i32
    %c0_i32_1 = arith.constant 0 : i32
    return %c0_i32, %c0_i32_0 : i32, i32
  }
  func.func @transform_2(%arg0: i32) -> (i32, i32) {
    %c0_i32 = arith.constant 0 : i32
    %c0_i32_0 = arith.constant 0 : i32
    %c0_i32_1 = arith.constant 0 : i32
    return %c0_i32, %c0_i32_0 : i32, i32
  }
  func.func @transform_3(%arg0: i32) -> (i32, i32) {
    %c0_i32 = arith.constant 0 : i32
    %c0_i32_0 = arith.constant 0 : i32
    %c0_i32_1 = arith.constant 0 : i32
    return %c0_i32, %c0_i32_0 : i32, i32
  }
  func.func @transform_4(%arg0: i32) -> (i32, i32) {
    %c0_i32 = arith.constant 0 : i32
    %c0_i32_0 = arith.constant 0 : i32
    %c0_i32_1 = arith.constant 0 : i32
    return %c0_i32, %c0_i32_0 : i32, i32
  }
  func.func @transform_5(%arg0: i32) -> (i32, i32) {
    %c0_i32 = arith.constant 0 : i32
    %c0_i32_0 = arith.constant 0 : i32
    return %arg0, %c0_i32 : i32, i32
  }
}

</mosaic_0001>

<bundles_post_ra>
// kernel: tpu_custom_call.1
= control target key start
LH: loop header
LB: loop body
LE: loop exit
PB: predicated region body
PF: predicated region fallthrough
CT: control target
= control target key end

     0   :  { %10 = vsyncpa [#allocation3], 0  ;;  %s594_s0 = inlined_call_operand.hbm [shape: bf16[8,128], index: 0, kind: input, shape index: {}]   ;;  %s595_s1 = inlined_call_operand.hbm [shape: bf16[128,128], index: 1, kind: input, shape index: {}]   ;;  %s596_s2 = inlined_call_operand.vmem [shape: f32[1,128], index: 2, kind: input, shape index: {}]   ;;  %s597_s3 = inlined_call_operand.hbm [shape: bf16[128,128], index: 3, kind: input, shape index: {}]   ;;  %s598_s4 = inlined_call_operand.vmem [shape: f32[1,128], index: 4, kind: input, shape index: {}]   ;;  %s599_s5 = inlined_call_operand.hbm [shape: f32[8,128], index: 5, kind: output, shape index: {}]  }
   0x1   :  { %11 = vsyncpa [#allocation6], 0 }
   0x2   :  { %12 = vsyncpa [#allocation4], 0  ;;  %s496_s18 = smov [#allocation5]   ;;  %s402_s22 = scalar_lea.hbm %s595_s1, 1024 }
   0x3   :  { %s28_s19 = sshll.u32 %s496_s18, 4  ;;  %p403_p0 = scmp.ne.s32.totalorder %s595_s1, %s402_s22  ;;  %s29_s19 = int_to_ptr.vmem [resolvable:$true] %s28_s19 }
   0x4   :  { %p406_p1 = scmp.lt.u32.totalorder %s402_s22, %s595_s1 }
   0x6   :  { %p408_p2 = pnand %p406_p1, %p403_p0 }
   0x8   :  { %411 = shalt.err (!%p408_p2)
}
   0x9   :  { %s412_s27 = scalar_lea.vmem %s29_s19, 1024  ;;  %p417_p4 = scmp.lt.s32.totalorder %s29_s19, %s29_s19 }
   0xa   :  { %p413_p3 = scmp.ne.s32.totalorder %s29_s19, %s412_s27  ;;  %p418_p5 = scmp.lt.s32.totalorder %s412_s27, %s412_s27 }
   0xc   :  { %p419_p6 = por %p418_p5, %p417_p4 }
   0xe   :  { %p420_p7 = pnand %p419_p6, %p413_p3 }
  0x10   :  { %423 = shalt.err (!%p420_p7)
}
  0x11   :  { %s497_s28 = smov 64   ;;  %s498_s29 = smov 4  }
  0x12   :  { %34 = dma.hbm_to_vmem [thread:$0]  %s595_s1, 1024, %s29_s19, [#allocation6], %s497_s28, %s497_s28, %s498_s29  }
  0x13   :  { %s499_s7 = smov [#allocation2]   ;;  %s500_s9 = smov [#allocation7]  }
  0x14   :  { %s19_s8 = sshll.u32 %s499_s7, 4  ;;  %s42_s10 = sshll.u32 %s500_s9, 4  ;;  %s20_s8 = int_to_ptr.vmem [resolvable:$true] %s19_s8  ;;  %s43_s10 = int_to_ptr.vmem [resolvable:$true] %s42_s10 }
  0x15   :  { %s424_s13 = scalar_lea.hbm %s594_s0, 64 }
  0x16   :  { %p425_p8 = scmp.ne.s32.totalorder %s594_s0, %s424_s13  ;;  %p428_p9 = scmp.lt.u32.totalorder %s424_s13, %s594_s0 }
  0x18   :  { %p430_p10 = pnand %p428_p9, %p425_p8 }
  0x1a   :  { %433 = shalt.err (!%p430_p10)
}
  0x1b   :  { %s434_s1 = scalar_lea.vmem %s20_s8, 64  ;;  %p439_p12 = scmp.lt.s32.totalorder %s20_s8, %s20_s8 }
  0x1c   :  { %p435_p11 = scmp.ne.s32.totalorder %s20_s8, %s434_s1  ;;  %p440_p13 = scmp.lt.s32.totalorder %s434_s1, %s434_s1 }
  0x1e   :  { %p441_p0 = por %p440_p13, %p439_p12 }
  0x20   :  { %p442_p1 = pnand %p441_p0, %p435_p11 }
  0x22   :  { %445 = shalt.err (!%p442_p1)
}
  0x23   :  { %22 = dma.hbm_to_vmem [thread:$0]  %s594_s0, 64, %s20_s8, [#allocation3]  }
  0x24   :  { %s446_s22 = scalar_lea.hbm %s597_s3, 1024 }
  0x25   :  { %p447_p2 = scmp.ne.s32.totalorder %s597_s3, %s446_s22  ;;  %p450_p3 = scmp.lt.u32.totalorder %s446_s22, %s597_s3 }
  0x27   :  { %p452_p4 = pnand %p450_p3, %p447_p2 }
  0x29   :  { %455 = shalt.err (!%p452_p4)
}
  0x2a   :  { %s456_s27 = scalar_lea.vmem %s43_s10, 1024  ;;  %p461_p6 = scmp.lt.s32.totalorder %s43_s10, %s43_s10 }
  0x2b   :  { %p457_p5 = scmp.ne.s32.totalorder %s43_s10, %s456_s27  ;;  %p462_p7 = scmp.lt.s32.totalorder %s456_s27, %s456_s27 }
  0x2d   :  { %p463_p8 = por %p462_p7, %p461_p6 }
  0x2f   :  { %p464_p9 = pnand %p463_p8, %p457_p5 }
  0x31   :  { %467 = shalt.err (!%p464_p9)
}
  0x32   :  { %48 = dma.hbm_to_vmem [thread:$0]  %s597_s3, 1024, %s43_s10, [#allocation6], %s497_s28, %s497_s28, %s498_s29  }
  0x33   :  { %490 = dma.done.wait [#allocation3], 64  }
  0x34   :  { %491 = vsyncadd [#allocation3], 4294967232 }
  0x35   :  { %492 = dma.done.wait [#allocation6], 2048  }
  0x36   :  { %493 = vsyncadd [#allocation6], 4294965248  ;;  %v501_v0 = vmov 0.0   ;;  %vm502_vm0 = vmmov 0   ;;  %v386_v1 = vld [vmem:[#allocation5] sm:$0xff]   ;;  %v387_v2 = vld [vmem:[#allocation5 + $0x8] sm:$0xff]  }
  0x37   :  { %338 = vmatprep.subr.bf16.mxu0 %v501_v0  ;;  %354 = vmatprep.mubr.msk.bf16.mxu0 %vm502_vm0, %v501_v0  ;;  %v388_v3 = vld [vmem:[#allocation5 + $0x10] sm:$0xff]   ;;  %v394_v4 = vld [vmem:[#allocation7] sm:$0xff]   ;;  %v389_v5 = vld [vmem:[#allocation5 + $0x18] sm:$0xff]   ;;  %s503_s7 = smov [#allocation8]  }
  0x38   :  { %358 = vmatprep.subr.bf16.mxu1 %v501_v0  ;;  %374 = vmatprep.mubr.msk.bf16.mxu1 %vm502_vm0, %v501_v0  ;;  %v395_v6 = vld [vmem:[#allocation7 + $0x8] sm:$0xff]   ;;  %v390_v7 = vld [vmem:[#allocation5 + $0x20] sm:$0xff]   ;;  %v396_v8 = vld [vmem:[#allocation7 + $0x10] sm:$0xff]   ;;  %s292_s8 = sshll.u32 %s503_s7, 4  ;;  %s293_s8 = int_to_ptr.vmem [resolvable:$true] %s292_s8 }
  0x39   :  { %339 = vmatpush3.bf16.msra.mxu0 %v386_v1  ;;  %359 = vmatpush3.bf16.msra.mxu1 %v394_v4  ;;  %v391_v9 = vld [vmem:[#allocation5 + $0x28] sm:$0xff]   ;;  %v397_v10 = vld [vmem:[#allocation7 + $0x18] sm:$0xff]   ;;  %v392_v11 = vld [vmem:[#allocation5 + $0x30] sm:$0xff]   ;;  %p473_p11 = scmp.lt.s32.totalorder %s293_s8, %s293_s8 }
  0x3a   :  { %340 = vmatprep.subr.bf16.mxu0 %v501_v0  ;;  %360 = vmatprep.subr.bf16.mxu1 %v501_v0  ;;  %v398_v12 = vld [vmem:[#allocation7 + $0x20] sm:$0xff]   ;;  %v393_v13 = vld [vmem:[#allocation5 + $0x38] sm:$0xff]   ;;  %v399_v14 = vld [vmem:[#allocation7 + $0x28] sm:$0xff]  }
  0x3b   :  { %v61_v15 = vld [vmem:[#allocation2] sm:$0xf]  ;;  %v400_v16 = vld [vmem:[#allocation7 + $0x30] sm:$0xff]  }
  0x3c   :  { %v401_v17 = vld [vmem:[#allocation7 + $0x38] sm:$0xff]  }
  0x3d   :  { %341 = vmatpush3.bf16.msra.mxu0 %v387_v2  ;;  %361 = vmatpush3.bf16.msra.mxu1 %v395_v6  ;;  %v302_v18 = vld [vmem:[%s596_s2] ss:$0 sm:$0xff]  ;;  %s468_s2 = scalar_lea.vmem %s293_s8, 128 }
  0x3e   :  { %342 = vmatprep.subr.bf16.mxu0 %v501_v0  ;;  %362 = vmatprep.subr.bf16.mxu1 %v501_v0  ;;  %v311_v25 = vld [vmem:[%s598_s4] ss:$0 sm:$0xff]  ;;  %p469_p10 = scmp.ne.s32.totalorder %s293_s8, %s468_s2  ;;  %p474_p12 = scmp.lt.s32.totalorder %s468_s2, %s468_s2 }
  0x40   :  { %p475_p13 = por %p474_p12, %p473_p11 }
  0x41   :  { %343 = vmatpush3.bf16.msra.mxu0 %v388_v3  ;;  %363 = vmatpush3.bf16.msra.mxu1 %v396_v8 }
  0x42   :  { %344 = vmatprep.subr.bf16.mxu0 %v501_v0  ;;  %364 = vmatprep.subr.bf16.mxu1 %v501_v0  ;;  %p476_p0 = pnand %p475_p13, %p469_p10 }
  0x45   :  { %345 = vmatpush3.bf16.msra.mxu0 %v389_v5  ;;  %365 = vmatpush3.bf16.msra.mxu1 %v397_v10 }
  0x46   :  { %346 = vmatprep.subr.bf16.mxu0 %v501_v0  ;;  %366 = vmatprep.subr.bf16.mxu1 %v501_v0 }
  0x49   :  { %347 = vmatpush3.bf16.msra.mxu0 %v390_v7  ;;  %367 = vmatpush3.bf16.msra.mxu1 %v398_v12 }
  0x4a   :  { %348 = vmatprep.subr.bf16.mxu0 %v501_v0  ;;  %368 = vmatprep.subr.bf16.mxu1 %v501_v0 }
  0x4d   :  { %349 = vmatpush3.bf16.msra.mxu0 %v391_v9  ;;  %369 = vmatpush3.bf16.msra.mxu1 %v399_v14 }
  0x4e   :  { %350 = vmatprep.subr.bf16.mxu0 %v501_v0  ;;  %370 = vmatprep.subr.bf16.mxu1 %v501_v0 }
  0x51   :  { %351 = vmatpush3.bf16.msra.mxu0 %v392_v11  ;;  %371 = vmatpush3.bf16.msra.mxu1 %v400_v16 }
  0x52   :  { %352 = vmatprep.subr.bf16.mxu0 %v501_v0  ;;  %372 = vmatprep.subr.bf16.mxu1 %v501_v0 }
  0x55   :  { %353 = vmatpush3.bf16.msra.mxu0 %v393_v13  ;;  %373 = vmatpush3.bf16.msra.mxu1 %v401_v17 }
  0x58   :  { %355 = vmatmul.mubr.bf16.vlgmr.msra.gmra.mrb[0].mxu0 %v61_v15 }
 0x12b   :  { %v167_v19 = vpop.f32.mrb[0].mxu0 }
 0x12c   :  { %v168_v20 = vadd.f32 %v302_v18, %v167_v19  ;;  %v356_v21 = vpop.f32.mrb[1].mxu0 }
 0x12d   :  { %v170_v22 = vpop.f32.mrb[2].mxu0 }
 0x12e   :  { %v173_v23 = vpack.c.bf16 %v168_v20, %v168_v20  ;;  %v357_v24 = vpop.f32.mrb[3].mxu0 }
 0x130   :  { %375 = vmatmul.mubr.bf16.vlgmr.msra.gmra.mrb[0].mxu1 %v173_v23 }
 0x203   :  { %v279_v26 = vpop.f32.mrb[0].mxu1 }
 0x204   :  { %v280_v27 = vadd.f32 %v311_v25, %v279_v26  ;;  %v376_v28 = vpop.f32.mrb[1].mxu1 }
 0x205   :  { %v282_v29 = vpop.f32.mrb[2].mxu1 }
 0x206   :  { %285 = vst [vmem:[#allocation8] sm:$0xff] %v280_v27  ;;  %v377_v30 = vpop.f32.mrb[3].mxu1 }
 0x207   :  { %479 = shalt.err (!%p476_p0)
}
 0x208   :  { %s480_s4 = scalar_lea.hbm %s599_s5, 128 }
 0x209   :  { %p481_p1 = scmp.ne.s32.totalorder %s599_s5, %s480_s4  ;;  %p484_p2 = scmp.lt.u32.totalorder %s480_s4, %s599_s5 }
 0x20b   :  { %p486_p3 = pnand %p484_p2, %p481_p1 }
 0x20d   :  { %489 = shalt.err (!%p486_p3)
}
 0x20e   :  { %295 = dma.vmem_to_hbm [thread:$0]  %s293_s8, 128, %s599_s5, [#allocation4]  }
 0x20f   :  { %494 = dma.done.wait [#allocation4], 128  }
 0x210   :  { %495 = vsyncadd [#allocation4], 4294967168 }
 0x211   :  { %299 = vsyncpa [#allocation3], 1 }
 0x212   :  { %300 = vsyncpa [#allocation6], 1 }
 0x213   :  { %301 = vsyncpa [#allocation4], 1 }

</bundles_post_ra>
